<compile_context>
chip_gen: v5e
topology: v5e:2x2
jax: 0.10.0
libtpu: 0.0.40
codegen_flags: <defaults>
</compile_context>

<pallas_src>
import jax
import jax.numpy as jnp
from jax.experimental import pallas as pl
from jax.experimental.pallas import tpu as pltpu


def _cdiv(a, b):
    return -(-a // b)


def _round_up(x, m):
    return ((x + m - 1) // m) * m


# ----------------------------------------------------------------------------
# Pallas kernel: one fused GEMM  (im2col rows) @ (conv ∘ dense fused weight)
# ----------------------------------------------------------------------------
def location_layer_kernel(xu_ref, wf_ref, o_ref):
    """xu_ref: (TILE, K*Cin) unfolded conv rows
    wf_ref:   (K*Cin, attn_dim) fused conv∘dense weight (VMEM-resident)
    o_ref:    (TILE, attn_dim)  lane-dense output tile
    """
    o_ref[...] = jnp.dot(
        xu_ref[...], wf_ref[...],
        preferred_element_type=jnp.float32,
        precision=jax.lax.Precision.HIGHEST,   # full-precision f32 MXU passes
    ).astype(o_ref.dtype)


# ----------------------------------------------------------------------------
# Wrapper: weight fusion + layout plumbing (pad + im2col) + pallas_call
# ----------------------------------------------------------------------------
def location_layer_forward(attention_weights_cat, w_conv, w_dense, *, tile_rows=2048):
    """attention_weights_cat: (B, 2, T);  w_conv: (F, 2, K) torch layout;
    w_dense: (D, F) torch layout.  Returns (B, T+1, D)."""
    B, cin, T = attention_weights_cat.shape
    n_filters, _, K = w_conv.shape
    attn_dim = w_dense.shape[0]
    pad = (K - 1) // 2
    t_out = T + 1                       # F.pad(1, 0) lengthens time by one
    kcin = K * cin

    # --- weight fusion (review #1): exact, since conv->dense is linear-linear.
    #   conv (F, Cin, K) -> (K*Cin, F);  dense (D, F) -> (F, D);  fused (K*Cin, D).
    w_conv_r = jnp.transpose(w_conv, (2, 1, 0)).reshape(kcin, n_filters)
    w_dense_r = jnp.transpose(w_dense, (1, 0))
    w_fused = jnp.dot(w_conv_r, w_dense_r,
                      precision=jax.lax.Precision.HIGHEST)          # (62, 128)

    # --- F.pad(1, 0) + conv "same" padding + im2col unfold (cheap: Cin == 2).
    xt = jnp.transpose(attention_weights_cat, (0, 2, 1))            # (B, T, Cin)
    xpad = jnp.pad(xt, ((0, 0), (pad + 1, pad), (0, 0)))            # (B, T+K, Cin)
    x_unf = jnp.concatenate(
        [xpad[:, k:k + t_out, :] for k in range(K)], axis=-1)       # (B, T_out, K*Cin)

    # --- row tiling: flatten (batch, time); balanced tiles, multiples of 8.
    n_rows = B * t_out
    tile_cap = max(8, _round_up(min(tile_rows, n_rows), 8))
    num_tiles = _cdiv(n_rows, tile_cap)
    if n_rows >= 1024:                  # enough work to feed both v7x TensorCores
        num_tiles = max(num_tiles, 2)
    tile = _round_up(_cdiv(n_rows, num_tiles), 8)   # padding waste < 8 rows/tile
    n_rows_pad = tile * num_tiles

    x_flat = x_unf.reshape(n_rows, kcin)
    if n_rows_pad != n_rows:
        x_flat = jnp.pad(x_flat, ((0, n_rows_pad - n_rows), (0, 0)))

    out_flat = pl.pallas_call(
        location_layer_kernel,
        out_shape=jax.ShapeDtypeStruct((n_rows_pad, attn_dim), jnp.float32),
        grid=(num_tiles,),
        in_specs=[
            # 62-wide contraction left unpadded (review #8); full last dim.
            pl.BlockSpec((tile, kcin), lambda i: (i, 0)),
            # fused weight stays VMEM-resident across the whole grid.
            pl.BlockSpec((kcin, attn_dim), lambda i: (0, 0)),
        ],
        # lane-dense 128-wide output, already in the (B*T_out, D) layout
        # PyTorch returns -> no output transpose anywhere.
        out_specs=pl.BlockSpec((tile, attn_dim), lambda i: (i, 0)),
        compiler_params=pltpu.CompilerParams(
            dimension_semantics=("parallel",)),
    )(x_flat, w_fused)

    return out_flat[:n_rows].reshape(B, t_out, attn_dim)


# ----------------------------------------------------------------------------
# Pure-JAX reference (matches the PyTorch module) for a correctness check
# ----------------------------------------------------------------------------
def location_layer_reference(attention_weights_cat, w_conv, w_dense):
    K = w_conv.shape[-1]
    pad = (K - 1) // 2
    xp = jnp.pad(attention_weights_cat, ((0, 0), (0, 0), (1, 0)))   # F.pad (1, 0)
    conv = jax.lax.conv_general_dilated(
        xp, w_conv, window_strides=(1,), padding=[(pad, pad)],
        dimension_numbers=("NCH", "OIH", "NCH"),
        precision=jax.lax.Precision.HIGHEST)                        # (B, F, T+1)
    return jnp.einsum("bft,df->btd", conv, w_dense,
                      precision=jax.lax.Precision.HIGHEST)          # (B, T+1, D)


if __name__ == "__main__":
    from math import sqrt

    # Small shapes consistent with the module (Tacotron2 defaults):
    #   attention_n_filters=32, attention_kernel_size=31, attention_dim=128.
    B, T = 2, 16
    N_FILTERS, KSIZE, ATTN_DIM = 32, 31, 128

    key = jax.random.PRNGKey(0)
    kx, kc, kd = jax.random.split(key, 3)

    # attention_weights_cat: (B, 2, T) — attention weights + cumulative weights.
    x = jax.random.normal(kx, (B, 2, T), dtype=jnp.float32)

    # ConvNorm: xavier_uniform, gain('linear') = 1.0, no bias, shape (F, 2, K).
    fan_in, fan_out = 2 * KSIZE, N_FILTERS * KSIZE
    bc = sqrt(6.0 / (fan_in + fan_out))
    w_conv = jax.random.uniform(kc, (N_FILTERS, 2, KSIZE),
                                minval=-bc, maxval=bc, dtype=jnp.float32)

    # LinearNorm: xavier_uniform, gain('tanh') = 5/3, no bias, shape (D, F).
    bd = (5.0 / 3.0) * sqrt(6.0 / (N_FILTERS + ATTN_DIM))
    w_dense = jax.random.uniform(kd, (ATTN_DIM, N_FILTERS),
                                 minval=-bd, maxval=bd, dtype=jnp.float32)

    fwd = jax.jit(location_layer_forward)
    out = jax.block_until_ready(fwd(x, w_conv, w_dense))

    assert out.shape == (B, T + 1, ATTN_DIM), out.shape
    assert bool(jnp.all(jnp.isfinite(out)))

    ref = location_layer_reference(x, w_conv, w_dense)
    # Tightened vs the previous 5e-2 abs check (~8x tighter in relative terms):
    # real layout/indexing bugs give O(1) relative error; the small headroom
    # covers weight-fusion reassociation and MXU f32 multi-pass rounding.
    rel_err = float(jnp.max(jnp.abs(out - ref)) / (jnp.max(jnp.abs(ref)) + 1e-12))
    assert rel_err < 5e-3, f"mismatch vs reference: rel_err={rel_err}"

    print("KERNEL_OK")
</pallas_src>

<mosaic_0001>
module attributes {stable_mosaic.version = 11 : i64} {
  func.func @location_layer_kernel(%arg0: i32, %arg1: memref<40x62xf32, #tpu.memory_space<vmem>>, %arg2: memref<62x128xf32, #tpu.memory_space<vmem>>, %arg3: memref<40x128xf32, #tpu.memory_space<vmem>>) attributes {dimension_semantics = [#tpu.dimension_semantics<parallel>], iteration_bounds = array<i64: 1>, scalar_prefetch = 0 : i64, scratch_operands = 0 : i64, tpu.core_type = #tpu.core_type<tc>, window_params = [{transform_indices = @transform_0, window_bounds = array<i64: 40, 62>}, {pipeline_mode = #tpu.pipeline_mode<synchronous>, transform_indices = @transform_1, window_bounds = array<i64: 62, 128>}, {transform_indices = @transform_2, window_bounds = array<i64: 40, 128>}]} {
    %c0 = arith.constant 0 : index
    %c0_0 = arith.constant 0 : index
    %0 = vector.load %arg1[%c0, %c0_0] : memref<40x62xf32, #tpu.memory_space<vmem>>, vector<40x62xf32>
    %c0_1 = arith.constant 0 : index
    %c0_2 = arith.constant 0 : index
    %1 = vector.load %arg2[%c0_1, %c0_2] : memref<62x128xf32, #tpu.memory_space<vmem>>, vector<62x128xf32>
    %cst = arith.constant dense<0.000000e+00> : vector<40x128xf32>
    %2 = tpu.matmul %0, %1, %cst {dimension_numbers = #tpu.dot_dimension_numbers<[1], [0], [0], [1], [0, 0, 1, 1], [], []>, precision = #tpu.contract_precision<fp32>} : vector<40x62xf32>, vector<62x128xf32>, vector<40x128xf32> -> vector<40x128xf32>
    %c0_3 = arith.constant 0 : index
    %c0_4 = arith.constant 0 : index
    %3 = vector.load %arg3[%c0_3, %c0_4] : memref<40x128xf32, #tpu.memory_space<vmem>>, vector<40x128xf32>
    tpu.vector_store %arg3[%c0_3, %c0_4], %2 {strides = array<i32>} : memref<40x128xf32, #tpu.memory_space<vmem>>, vector<40x128xf32>,
    return
  }
  func.func @transform_0(%arg0: i32) -> (i32, i32) {
    %c0_i32 = arith.constant 0 : i32
    %c0_i32_0 = arith.constant 0 : i32
    return %arg0, %c0_i32 : i32, i32
  }
  func.func @transform_1(%arg0: i32) -> (i32, i32) {
    %c0_i32 = arith.constant 0 : i32
    %c0_i32_0 = arith.constant 0 : i32
    %c0_i32_1 = arith.constant 0 : i32
    return %c0_i32, %c0_i32_0 : i32, i32
  }
  func.func @transform_2(%arg0: i32) -> (i32, i32) {
    %c0_i32 = arith.constant 0 : i32
    %c0_i32_0 = arith.constant 0 : i32
    return %arg0, %c0_i32 : i32, i32
  }
}

</mosaic_0001>

<bundles_post_ra>
// kernel: location_layer_forward.1
= control target key start
LH: loop header
LB: loop body
LE: loop exit
PB: predicated region body
PF: predicated region fallthrough
CT: control target
= control target key end

     0   :  { %vm40_vm0 = vcmask 1045504   ;;  %vm24_vm1 = vcmask 506880   ;;  %s703_s1 = inlined_call_operand.vmem [shape: f32[62,128], index: 1, kind: input, shape index: {}]   ;;  %s704_s0 = inlined_call_operand.vmem [shape: f32[40,62], index: 0, kind: input, shape index: {}]   ;;  %s705_s2 = inlined_call_operand.vmem [shape: f32[40,128], index: 2, kind: output, shape index: {}]  }
   0x1   :  { %v23_v0 = vld [vmem:[%s703_s1 + $0x38] sm:$0x3f]  ;;  %v22_v1 = vld [vmem:[%s703_s1 + $0x30] sm:$0xff]  ;;  %v21_v2 = vld [vmem:[%s703_s1 + $0x28] sm:$0xff] }
   0x2   :  { %v42_v3 = vsel %vm40_vm0, %v23_v0, 0  ;;  %v454_v4 = vand.u32 4294901760, %v22_v1  ;;  %v456_v5 = vand.u32 4294901760, %v21_v2  ;;  %v20_v6 = vld [vmem:[%s703_s1 + $0x20] sm:$0xff]  ;;  %v19_v7 = vld [vmem:[%s703_s1 + $0x18] sm:$0xff]  ;;  %v18_v8 = vld [vmem:[%s703_s1 + $0x10] sm:$0xff] }
   0x3   :  { %v467_v9 = vand.u32 4294901760, %v42_v3  ;;  %v469_v10 = vand.u32 4294901760, %v20_v6  ;;  %v471_v11 = vand.u32 4294901760, %v19_v7  ;;  %v473_v12 = vand.u32 4294901760, %v18_v8  ;;  %v17_v13 = vld [vmem:[%s703_s1 + $0x8] sm:$0xff]  ;;  %v13_v17 = vld [vmem:[%s704_s0 + $0x10] sm:$0xff] }
   0x4   :  { %v479_v14 = vsub.f32 %v22_v1, %v454_v4  ;;  %v481_v15 = vand.u32 4294901760, %v17_v13  ;;  %v484_v16 = vsub.f32 %v21_v2, %v456_v5  ;;  %v16_v19 = vld [vmem:[%s703_s1] sm:$0xff]  ;;  %v32_v21 = vsel %vm24_vm1, %v13_v17, 0  ;;  %v14_v36 = vld [vmem:[%s704_s0 + $0x18] sm:$0xff]  ;;  %v12_v49 = vld [vmem:[%s704_s0 + $0x8] sm:$0xff] }
   0x5   :  { %414 = vmatpush.msra.mxu2 %v467_v9  ;;  %v491_v18 = vsub.f32 %v42_v3, %v467_v9  ;;  %v497_v20 = vsub.f32 %v20_v6, %v469_v10  ;;  %v501_v22 = vsub.f32 %v19_v7, %v471_v11  ;;  %53 = vmatpush.msra.mxu0 %v467_v9  ;;  %v506_v25 = vand.u32 4294901760, %v32_v21  ;;  %v15_v39 = vld [vmem:[%s704_s0 + $0x20] sm:$0xff] }
   0x6   :  { %v125_v23 = vand.u32 4294901760, %v479_v14  ;;  %v131_v24 = vand.u32 4294901760, %v484_v16  ;;  %v509_v26 = vsub.f32 %v18_v8, %v473_v12  ;;  %v519_v31 = vand.u32 4294901760, %v16_v19  ;;  %v11_v40 = vld [vmem:[%s704_s0] sm:$0xff] }
   0x7   :  { %415 = vmatpush.msra.mxu2 %v454_v4  ;;  %v119_v27 = vand.u32 4294901760, %v491_v18  ;;  %v137_v28 = vand.u32 4294901760, %v497_v20  ;;  %v143_v29 = vand.u32 4294901760, %v501_v22  ;;  %55 = vmatpush.msra.mxu0 %v454_v4  ;;  %v522_v32 = vsub.f32 %v32_v21, %v506_v25 }
   0x8   :  { %v126_v30 = vsub.f32 %v479_v14, %v125_v23  ;;  %v525_v33 = vsub.f32 %v17_v13, %v481_v15  ;;  %v132_v35 = vsub.f32 %v484_v16, %v131_v24  ;;  %v149_v38 = vand.u32 4294901760, %v509_v26 }
   0x9   :  { %416 = vmatpush.msra.mxu2 %v456_v5  ;;  %v120_v34 = vsub.f32 %v491_v18, %v119_v27  ;;  %57 = vmatpush.msra.mxu0 %v456_v5  ;;  %v86_v37 = vand.u32 4294901760, %v522_v32  ;;  %v138_v43 = vsub.f32 %v497_v20, %v137_v28  ;;  %v144_v44 = vsub.f32 %v501_v22, %v143_v29 }
   0xa   :  { %v127_v42 = vand.u32 4294901760, %v126_v30  ;;  %v155_v46 = vand.u32 4294901760, %v525_v33  ;;  %v559_v47 = vsub.f32 %v16_v19, %v519_v31  ;;  %v35_v48 = vsel %vm24_vm1, %v14_v36, 0 }
   0xb   :  { %417 = vmatpush.msra.mxu2 %v469_v10  ;;  %v121_v41 = vand.u32 4294901760, %v120_v34  ;;  %59 = vmatpush.msra.mxu0 %v469_v10  ;;  %v87_v45 = vsub.f32 %v522_v32, %v86_v37  ;;  %v133_v50 = vand.u32 4294901760, %v132_v35  ;;  %v566_v51 = vand.u32 4294901760, %v35_v48 }
   0xc   :  { %v38_v52 = vsel %vm24_vm1, %v15_v39, 0  ;;  %v26_v53 = vsel %vm24_vm1, %v11_v40, 0  ;;  %v150_v54 = vsub.f32 %v509_v26, %v149_v38  ;;  %v139_v56 = vand.u32 4294901760, %v138_v43 }
   0xd   :  { %418 = vmatpush.msra.mxu2 %v471_v11  ;;  %422 = vmatpush.msra.mxu3 %v121_v41  ;;  %v574_v55 = vand.u32 4294901760, %v26_v53  ;;  %v161_v57 = vand.u32 4294901760, %v559_v47  ;;  %v579_v58 = vsub.f32 %v35_v48, %v566_v51  ;;  %v29_v59 = vsel %vm24_vm1, %v12_v49, 0 }
   0xe   :  { %122 = vmatpush.msra.mxu1 %v121_v41  ;;  %61 = vmatpush.msra.mxu0 %v471_v11  ;;  %v88_v60 = vand.u32 4294901760, %v87_v45  ;;  %v582_v61 = vand.u32 4294901760, %v38_v52  ;;  %v145_v63 = vand.u32 4294901760, %v144_v44  ;;  %v156_v0 = vsub.f32 %v525_v33, %v155_v46 }
   0xf   :  { %419 = vmatpush.msra.mxu2 %v473_v12  ;;  %423 = vmatpush.msra.mxu3 %v127_v42  ;;  %v586_v62 = vsub.f32 %v26_v53, %v574_v55  ;;  %v94_v1 = vand.u32 4294901760, %v579_v58  ;;  %v595_v3 = vand.u32 4294901760, %v29_v59  ;;  %v151_v6 = vand.u32 4294901760, %v150_v54 }
  0x10   :  { %128 = vmatpush.msra.mxu1 %v127_v42  ;;  %63 = vmatpush.msra.mxu0 %v473_v12  ;;  %v162_v7 = vsub.f32 %v559_v47, %v161_v57  ;;  %v605_v13 = vsub.f32 %v38_v52, %v582_v61  ;;  %v157_v19 = vand.u32 4294901760, %v156_v0 }
  0x11   :  { %420 = vmatpush.msra.mxu2 %v481_v15  ;;  %424 = vmatpush.msra.mxu3 %v133_v50  ;;  %v70_v2 = vand.u32 4294901760, %v586_v62  ;;  %v95_v8 = vsub.f32 %v579_v58, %v94_v1  ;;  %v613_v30 = vsub.f32 %v29_v59, %v595_v3 }
  0x12   :  { %134 = vmatpush.msra.mxu1 %v133_v50  ;;  %65 = vmatpush.msra.mxu0 %v481_v15  ;;  %v163_v34 = vand.u32 4294901760, %v162_v7  ;;  %v102_v36 = vand.u32 4294901760, %v605_v13 }
  0x13   :  { %421 = vmatpush.msra.mxu2 %v519_v31  ;;  %425 = vmatpush.msra.mxu3 %v139_v56  ;;  %v71_v17 = vsub.f32 %v586_v62, %v70_v2  ;;  %v96_v35 = vand.u32 4294901760, %v95_v8  ;;  %v78_v39 = vand.u32 4294901760, %v613_v30 }
  0x14   :  { %89 = vmatmul.f32.vlgmr.msra.gmra.mxu2 %v88_v60  ;;  %140 = vmatpush.msra.mxu1 %v139_v56  ;;  %v103_v40 = vsub.f32 %v605_v13, %v102_v36 }
  0x15   :  { %426 = vmatpush.msra.mxu3 %v145_v63  ;;  %196 = vmatpush.msrb.mxu2 %v491_v18  ;;  %v72_v21 = vand.u32 4294901760, %v71_v17  ;;  %v79_v18 = vsub.f32 %v613_v30, %v78_v39 }
  0x16   :  { %146 = vmatpush.msra.mxu1 %v145_v63  ;;  %67 = vmatpush.msra.mxu0 %v519_v31 }
  0x17   :  { %427 = vmatpush.msra.mxu3 %v151_v6  ;;  %199 = vmatpush.msrb.mxu2 %v479_v14  ;;  %v80_v14 = vand.u32 4294901760, %v79_v18 }
  0x18   :  { %152 = vmatpush.msra.mxu1 %v151_v6  ;;  %73 = vmatmul.f32.vlgmr.msra.gmra.mxu0 %v72_v21 }
  0x19   :  { %428 = vmatpush.msra.mxu3 %v157_v19  ;;  %202 = vmatpush.msrb.mxu2 %v484_v16 }
  0x1a   :  { %158 = vmatpush.msra.mxu1 %v157_v19  ;;  %310 = vmatpush.msrb.mxu0 %v119_v27  ;;  %v104_v27 = vand.u32 4294901760, %v103_v40 }
  0x1b   :  { %429 = vmatpush.msra.mxu3 %v163_v34  ;;  %205 = vmatpush.msrb.mxu2 %v497_v20 }
  0x1c   :  { %97 = vmatmul.f32.gmra.mxu2 %v96_v35  ;;  %174 = vmatmul.f32.vlgmr.msra.gmra.mxu3 %v506_v25 }
  0x1d   :  { %253 = vmatpush.msrb.mxu3 %v467_v9  ;;  %208 = vmatpush.msrb.mxu2 %v501_v22 }
  0x1e   :  { %164 = vmatpush.msra.mxu1 %v163_v34  ;;  %314 = vmatpush.msrb.mxu0 %v125_v23 }
  0x1f   :  { %255 = vmatpush.msrb.mxu3 %v454_v4  ;;  %211 = vmatpush.msrb.mxu2 %v509_v26 }
  0x20   :  { %166 = vmatmul.f32.vlgmr.msra.gmra.mxu1 %v574_v55  ;;  %318 = vmatpush.msrb.mxu0 %v131_v24 }
  0x21   :  { %257 = vmatpush.msrb.mxu3 %v456_v5  ;;  %214 = vmatpush.msrb.mxu2 %v525_v33 }
  0x22   :  { %369 = vmatpush.msrb.mxu1 %v467_v9  ;;  %322 = vmatpush.msrb.mxu0 %v137_v28 }
  0x23   :  { %259 = vmatpush.msrb.mxu3 %v469_v10  ;;  %217 = vmatpush.msrb.mxu2 %v559_v47 }
  0x24   :  { %105 = vmatmul.f32.gmra.mxu2 %v104_v27  ;;  %178 = vmatmul.f32.gmra.mxu3 %v566_v51 }
  0x25   :  { %261 = vmatpush.msrb.mxu3 %v471_v11  ;;  %371 = vmatpush.msrb.mxu1 %v454_v4 }
  0x26   :  { %81 = vmatmul.f32.gmra.mxu0 %v80_v14 }
  0x27   :  { %263 = vmatpush.msrb.mxu3 %v473_v12  ;;  %373 = vmatpush.msrb.mxu1 %v456_v5 }
  0x28   :  { %170 = vmatmul.f32.gmra.mxu1 %v595_v3  ;;  %326 = vmatpush.msrb.mxu0 %v143_v29 }
  0x29   :  { %265 = vmatpush.msrb.mxu3 %v481_v15  ;;  %375 = vmatpush.msrb.mxu1 %v469_v10 }
  0x2a   :  { %330 = vmatpush.msrb.mxu0 %v149_v38 }
  0x2b   :  { %267 = vmatpush.msrb.mxu3 %v519_v31  ;;  %377 = vmatpush.msrb.mxu1 %v471_v11 }
  0x2c   :  { %182 = vmatmul.f32.gmra.mxu3 %v582_v61  ;;  %220 = vmatmul.f32.vlgmr.msrb.gmra.mxu2 %v586_v62 }
  0x2d   :  { %334 = vmatpush.msrb.mxu0 %v155_v46  ;;  %379 = vmatpush.msrb.mxu1 %v473_v12 }
  0x2f   :  { %338 = vmatpush.msrb.mxu0 %v161_v57  ;;  %381 = vmatpush.msrb.mxu1 %v481_v15 }
  0x30   :  { %340 = vmatmul.f32.vlgmr.msrb.gmra.mxu0 %v574_v55 }
  0x31   :  { %383 = vmatpush.msrb.mxu1 %v519_v31 }
  0x32   :  { %385 = vmatmul.f32.vlgmr.msrb.gmra.mxu1 %v574_v55 }
  0x34   :  { %225 = vmatmul.f32.gmra.mxu2 %v613_v30  ;;  %271 = vmatmul.f32.vlgmr.msrb.gmra.mxu3 %v70_v2 }
  0x38   :  { %344 = vmatmul.f32.gmra.mxu0 %v595_v3 }
  0x3a   :  { %389 = vmatmul.f32.gmra.mxu1 %v595_v3 }
  0x3c   :  { %230 = vmatmul.f32.gmra.mxu2 %v522_v32  ;;  %277 = vmatmul.f32.gmra.mxu3 %v78_v39 }
  0x40   :  { %348 = vmatmul.f32.gmra.mxu0 %v506_v25 }
  0x42   :  { %393 = vmatmul.f32.gmra.mxu1 %v506_v25 }
  0x44   :  { %235 = vmatmul.f32.gmra.mxu2 %v579_v58  ;;  %283 = vmatmul.f32.gmra.mxu3 %v86_v37 }
  0x48   :  { %352 = vmatmul.f32.gmra.mxu0 %v566_v51 }
  0x4a   :  { %397 = vmatmul.f32.gmra.mxu1 %v566_v51 }
  0x4c   :  { %240 = vmatmul.f32.gmra.mxu2 %v605_v13  ;;  %289 = vmatmul.f32.gmra.mxu3 %v94_v1 }
  0x50   :  { %356 = vmatmul.f32.gmra.mxu0 %v582_v61 }
  0x52   :  { %401 = vmatmul.f32.gmra.mxu1 %v582_v61 }
  0x54   :  { %295 = vmatmul.f32.gmra.mxu3 %v102_v36 }
  0x95   :  { %v74_v5 = vpop.f32.mrf.mxu0 }
  0x97   :  { %v90_v4 = vpop.f32.mrf.mxu2 }
  0x9d   :  { %v167_v9 = vpop.f32.mrf.mxu1 }
  0x9e   :  { %v168_v26 = vadd.f32 %v167_v9, %v74_v5 }
  0x9f   :  { %v98_v10 = vpop.f32.mrf.mxu2  ;;  %v175_v11 = vpop.f32.mrf.mxu3 }
  0xa0   :  { %v176_v49 = vadd.f32 %v175_v11, %v90_v4 }
  0xa3   :  { %v82_v12 = vpop.f32.mrf.mxu0 }
  0xa5   :  { %v171_v20 = vpop.f32.mrf.mxu1 }
  0xa6   :  { %v172_v41 = vadd.f32 %v171_v20, %v82_v12 }
  0xa7   :  { %v106_v15 = vpop.f32.mrf.mxu2  ;;  %v179_v16 = vpop.f32.mrf.mxu3 }
  0xa8   :  { %v180_v57 = vadd.f32 %v179_v16, %v98_v10 }
  0xad   :  { %v341_v22 = vpop.f32.mrf.mxu0 }
  0xaf   :  { %v183_v23 = vpop.f32.mrf.mxu3  ;;  %v221_v24 = vpop.f32.mrf.mxu2 }
  0xb0   :  { %v386_v25 = vpop.f32.mrf.mxu1  ;;  %v222_v28 = vadd.f32 %v221_v24, %v168_v26  ;;  %v184_v2 = vadd.f32 %v183_v23, %v106_v15 }
  0xb5   :  { %v345_v33 = vpop.f32.mrf.mxu0 }
  0xb7   :  { %v226_v29 = vpop.f32.mrf.mxu2  ;;  %v272_v31 = vpop.f32.mrf.mxu3 }
  0xb8   :  { %v273_v32 = vadd.f32 %v272_v31, %v222_v28  ;;  %v390_v38 = vpop.f32.mrf.mxu1  ;;  %v227_v43 = vadd.f32 %v226_v29, %v172_v41 }
  0xba   :  { %v342_v37 = vadd.f32 %v341_v22, %v273_v32 }
  0xbc   :  { %v387_v42 = vadd.f32 %v386_v25, %v342_v37 }
  0xbd   :  { %v349_v48 = vpop.f32.mrf.mxu0 }
  0xbe   :  { %405 = vst [vmem:[%s705_s2] sm:$0xff] %v387_v42 }
  0xbf   :  { %v231_v44 = vpop.f32.mrf.mxu2  ;;  %v278_v45 = vpop.f32.mrf.mxu3 }
  0xc0   :  { %v279_v46 = vadd.f32 %v278_v45, %v227_v43  ;;  %v394_v51 = vpop.f32.mrf.mxu1  ;;  %v232_v52 = vadd.f32 %v231_v44, %v176_v49 }
  0xc2   :  { %v346_v47 = vadd.f32 %v345_v33, %v279_v46 }
  0xc4   :  { %v391_v50 = vadd.f32 %v390_v38, %v346_v47 }
  0xc5   :  { %v353_v59 = vpop.f32.mrf.mxu0 }
  0xc6   :  { %406 = vst [vmem:[%s705_s2 + $0x8] sm:$0xff] %v391_v50 }
  0xc7   :  { %v284_v53 = vpop.f32.mrf.mxu3  ;;  %v236_v55 = vpop.f32.mrf.mxu2 }
  0xc8   :  { %v285_v54 = vadd.f32 %v284_v53, %v232_v52  ;;  %v237_v60 = vadd.f32 %v236_v55, %v180_v57  ;;  %v398_v62 = vpop.f32.mrf.mxu1 }
  0xca   :  { %v350_v56 = vadd.f32 %v349_v48, %v285_v54 }
  0xcc   :  { %v395_v58 = vadd.f32 %v394_v51, %v350_v56 }
  0xcd   :  { %v357_v8 = vpop.f32.mrf.mxu0 }
  0xce   :  { %407 = vst [vmem:[%s705_s2 + $0x10] sm:$0xff] %v395_v58 }
  0xcf   :  { %v290_v61 = vpop.f32.mrf.mxu3  ;;  %v241_v1 = vpop.f32.mrf.mxu2 }
  0xd0   :  { %v291_v63 = vadd.f32 %v290_v61, %v237_v60  ;;  %v242_v6 = vadd.f32 %v241_v1, %v184_v2  ;;  %v402_v17 = vpop.f32.mrf.mxu1 }
  0xd2   :  { %v354_v0 = vadd.f32 %v353_v59, %v291_v63 }
  0xd4   :  { %v399_v3 = vadd.f32 %v398_v62, %v354_v0 }
  0xd6   :  { %408 = vst [vmem:[%s705_s2 + $0x18] sm:$0xff] %v399_v3 }
  0xd7   :  { %v296_v7 = vpop.f32.mrf.mxu3 }
  0xd8   :  { %v297_v13 = vadd.f32 %v296_v7, %v242_v6 }
  0xda   :  { %v358_v19 = vadd.f32 %v357_v8, %v297_v13 }
  0xdc   :  { %v403_v21 = vadd.f32 %v402_v17, %v358_v19 }
  0xde   :  { %409 = vst [vmem:[%s705_s2 + $0x20] sm:$0xff] %v403_v21 }

</bundles_post_ra>
